<compile_context>
chip_gen: v6e
topology: v6e:2x2x1
jax: 0.10.0
libtpu: 0.0.40
codegen_flags: <defaults>
</compile_context>

<pallas_src>
import functools

import jax
import jax.numpy as jnp
from jax.experimental import pallas as pl
from jax.experimental.pallas import tpu as pltpu

_LANE = 128
_SUBLANE_BF16 = 16   # bf16 packs 16 rows per sublane group

# Tile bases (sweepable).  bf16 tiles at 512^3 use only a few MiB of VMEM,
# well inside v5e's 16 MiB scoped default and v7x's 64 MiB physical VMEM.
_TM_BASE = 512
_TN_BASE = 512
_TK_BASE = 512


def _round_up(x, m):
    return ((x + m - 1) // m) * m


def _choose_tile(dim, base, min_align):
    """Pick (tile, padded_dim) for one dimension.

    - If the dim fits in one tile, pad only up to `min_align` (sublane/lane
      minimum), not a full 128/512 tile -> tiny batches stay tiny.
    - Otherwise pick the largest of {base, base//2, 128} whose padding waste
      is <= 25% of the padded dim (padding-aware fallback).
    """
    if dim <= base:
        t = _round_up(dim, min_align)
        return t, t
    for t in (base, base // 2, _LANE):
        t = max(t, _LANE)
        pad = _round_up(dim, t)
        if (pad - dim) * 4 <= pad:          # waste <= 25%
            return t, pad
    t = _LANE
    return t, _round_up(dim, t)


def _linear_kernel(x_ref, w_ref, b_ref, o_ref):
    k = pl.program_id(2)

    @pl.when(k == 0)
    def _init():
        # Output block index is constant in k -> it is the VMEM-resident
        # accumulator; no separate scratch needed for an f32 output.
        o_ref[...] = jnp.zeros_like(o_ref)

    # bf16 x bf16 on the MXU, f32 accumulation.
    o_ref[...] += jnp.dot(
        x_ref[...], w_ref[...], preferred_element_type=jnp.float32
    )

    @pl.when(k == pl.num_programs(2) - 1)
    def _finalize():
        # Bias added exactly once, in f32 (broadcast over the tm rows).
        o_ref[...] += b_ref[...]


@functools.partial(jax.jit, static_argnames=("out_d", "tn", "tk"))
def linear_pallas(x, w_t_pad, b_pad, *, out_d, tn, tk):
    """x: (B, in_d) any float; w_t_pad: (K_pad, N_pad) bf16 (pre-padded,
    pre-transposed); b_pad: (1, N_pad) f32.  Returns (B, out_d) f32."""
    B, K = x.shape
    K_pad, N_pad = w_t_pad.shape

    # Only the activations are padded per call (weight/bias were padded once).
    tm, M_pad = _choose_tile(B, _TM_BASE, _SUBLANE_BF16)
    x = x.astype(jnp.bfloat16)
    if (M_pad, K_pad) != (B, K):
        x = jnp.pad(x, ((0, M_pad - B), (0, K_pad - K)))

    grid = (M_pad // tm, N_pad // tn, K_pad // tk)

    # Weight stream is the dominant HBM traffic; give it a 3rd buffer when
    # there are enough K steps to hide DMA latency jitter.
    w_bufs = 3 if grid[2] >= 3 else 2
    if w_bufs == 3:
        w_spec = pl.BlockSpec((tk, tn), lambda i, j, k: (k, j),
                              pipeline_mode=pl.Buffered(3))
    else:
        w_spec = pl.BlockSpec((tk, tn), lambda i, j, k: (k, j))

    # VMEM budget: bf16 x tiles (double-buffered), bf16 weight tiles
    # (w_bufs-deep), f32 bias, f32 output blocks.  Cap at 48 MiB so the
    # request is valid on v7x (64 MiB physical) as well as v5e/v6e.
    vmem_needed = (
        2 * tm * tk * 2
        + w_bufs * tk * tn * 2
        + 2 * tn * 4
        + 2 * tm * tn * 4
    )
    vmem_limit = min(int(vmem_needed * 2) + (4 << 20), 48 << 20)

    cost = pl.CostEstimate(
        flops=2 * M_pad * N_pad * K_pad,
        transcendentals=0,
        bytes_accessed=(M_pad * K_pad * 2 + K_pad * N_pad * 2
                        + N_pad * 4 + M_pad * N_pad * 4),
    )

    out_pad = pl.pallas_call(
        _linear_kernel,
        out_shape=jax.ShapeDtypeStruct((M_pad, N_pad), jnp.float32),
        grid_spec=pltpu.PrefetchScalarGridSpec(
            num_scalar_prefetch=0,
            grid=grid,
            in_specs=[
                pl.BlockSpec((tm, tk), lambda i, j, k: (i, k)),   # x (bf16)
                w_spec,                                           # w_t (bf16)
                pl.BlockSpec((1, tn), lambda i, j, k: (0, j)),    # bias (f32)
            ],
            out_specs=pl.BlockSpec((tm, tn), lambda i, j, k: (i, j)),
        ),
        compiler_params=pltpu.CompilerParams(
            dimension_semantics=("parallel", "parallel", "arbitrary"),
            vmem_limit_bytes=vmem_limit,
        ),
        cost_estimate=cost,
    )(x, w_t_pad, b_pad)

    if (M_pad, N_pad) != (B, out_d):
        out_pad = out_pad[:B, :out_d]
    return out_pad


class Layer:
    """JAX/Pallas equivalent of the PyTorch `Layer` (single nn.Linear)."""

    def __init__(self, in_d, out_d, key):
        kw, kb = jax.random.split(key)
        # Mimic torch.nn.Linear init: uniform(-1/sqrt(in_d), 1/sqrt(in_d)).
        bound = 1.0 / float(in_d) ** 0.5
        w_t = jax.random.uniform(
            kw, (in_d, out_d), dtype=jnp.float32, minval=-bound, maxval=bound
        )
        b = jax.random.uniform(
            kb, (1, out_d), dtype=jnp.float32, minval=-bound, maxval=bound
        )

        self.in_d = in_d
        self.out_d = out_d

        # Choose K/N tiles once, pre-pad + pre-transpose the weight and cast
        # it to bf16 here so no per-call weight pad/cast is needed.
        self.tk, k_pad = _choose_tile(in_d, _TK_BASE, _LANE)
        self.tn, n_pad = _choose_tile(out_d, _TN_BASE, _LANE)
        self.w_t = jnp.pad(
            w_t, ((0, k_pad - in_d), (0, n_pad - out_d))
        ).astype(jnp.bfloat16)
        self.b = jnp.pad(b, ((0, 0), (0, n_pad - out_d)))  # bias stays f32

    def __call__(self, x):
        return linear_pallas(
            x, self.w_t, self.b, out_d=self.out_d, tn=self.tn, tk=self.tk
        )


if __name__ == "__main__":
    key = jax.random.PRNGKey(0)
    k_in, k_layer = jax.random.split(key)

    batch, in_d, out_d = 8, 32, 64
    x = jax.random.normal(k_in, (batch, in_d), dtype=jnp.float32)

    layer = Layer(in_d, out_d, k_layer)
    y = jax.block_until_ready(layer(x))

    # Reference in the same arithmetic (bf16 inputs, f32 accumulate).
    w_ref = layer.w_t[:in_d, :out_d].astype(jnp.float32)
    b_ref = layer.b[:, :out_d]
    y_ref = x.astype(jnp.bfloat16).astype(jnp.float32) @ w_ref + b_ref

    assert y.shape == (batch, out_d)
    assert jnp.allclose(y, y_ref, atol=1e-4, rtol=1e-4)

    print("KERNEL_OK")
</pallas_src>

<mosaic_0001>
module attributes {stable_mosaic.version = 11 : i64} {
  func.func @_linear_kernel(%arg0: i32, %arg1: i32, %arg2: i32, %arg3: memref<16x128xbf16, #tpu.memory_space<vmem>>, %arg4: memref<128x128xbf16, #tpu.memory_space<vmem>>, %arg5: memref<1x128xf32, #tpu.memory_space<vmem>>, %arg6: memref<16x128xf32, #tpu.memory_space<vmem>>) attributes {dimension_semantics = [#tpu.dimension_semantics<parallel>, #tpu.dimension_semantics<parallel>, #tpu.dimension_semantics<arbitrary>], iteration_bounds = array<i64: 1, 1, 1>, scalar_prefetch = 0 : i64, scratch_operands = 0 : i64, tpu.core_type = #tpu.core_type<tc>, window_params = [{transform_indices = @transform_0, window_bounds = array<i64: 16, 128>}, {transform_indices = @transform_1, window_bounds = array<i64: 128, 128>}, {transform_indices = @transform_2, window_bounds = array<i64: 1, 128>}, {transform_indices = @transform_3, window_bounds = array<i64: 16, 128>}]} {
    %c0_i32 = arith.constant 0 : i32
    %0 = arith.cmpi eq, %arg2, %c0_i32 : i32
    %1 = arith.extui %0 : i1 to i32
    %c0_i32_0 = arith.constant 0 : i32
    %2 = arith.cmpi ne, %1, %c0_i32_0 : i32
    scf.if %2 {
      %cst_10 = arith.constant 0.000000e+00 : f32
      %12 = vector.broadcast %cst_10 : f32 to vector<16x128xf32>
      %c0_11 = arith.constant 0 : index
      %c0_12 = arith.constant 0 : index
      %13 = vector.load %arg6[%c0_11, %c0_12] : memref<16x128xf32, #tpu.memory_space<vmem>>, vector<16x128xf32>
      tpu.vector_store %arg6[%c0_11, %c0_12], %12 {strides = array<i32>} : memref<16x128xf32, #tpu.memory_space<vmem>>, vector<16x128xf32>,
    } else {
    }
    %c0 = arith.constant 0 : index
    %c0_1 = arith.constant 0 : index
    %3 = vector.load %arg6[%c0, %c0_1] : memref<16x128xf32, #tpu.memory_space<vmem>>, vector<16x128xf32>
    %c0_2 = arith.constant 0 : index
    %c0_3 = arith.constant 0 : index
    %4 = vector.load %arg3[%c0_2, %c0_3] : memref<16x128xbf16, #tpu.memory_space<vmem>>, vector<16x128xbf16>
    %c0_4 = arith.constant 0 : index
    %c0_5 = arith.constant 0 : index
    %5 = vector.load %arg4[%c0_4, %c0_5] : memref<128x128xbf16, #tpu.memory_space<vmem>>, vector<128x128xbf16>
    %cst = arith.constant dense<0.000000e+00> : vector<16x128xf32>
    %6 = tpu.matmul %4, %5, %cst {dimension_numbers = #tpu.dot_dimension_numbers<[1], [0], [0], [1], [0, 0, 1, 1], [], []>} : vector<16x128xbf16>, vector<128x128xbf16>, vector<16x128xf32> -> vector<16x128xf32>
    %7 = arith.addf %3, %6 : vector<16x128xf32>
    %c0_6 = arith.constant 0 : index
    %c0_7 = arith.constant 0 : index
    %8 = vector.load %arg6[%c0_6, %c0_7] : memref<16x128xf32, #tpu.memory_space<vmem>>, vector<16x128xf32>
    tpu.vector_store %arg6[%c0_6, %c0_7], %7 {strides = array<i32>} : memref<16x128xf32, #tpu.memory_space<vmem>>, vector<16x128xf32>,
    %c0_i32_8 = arith.constant 0 : i32
    %9 = arith.cmpi eq, %arg2, %c0_i32_8 : i32
    %10 = arith.extui %9 : i1 to i32
    %c0_i32_9 = arith.constant 0 : i32
    %11 = arith.cmpi ne, %10, %c0_i32_9 : i32
    scf.if %11 {
      %c0_10 = arith.constant 0 : index
      %c0_11 = arith.constant 0 : index
      %12 = vector.load %arg6[%c0_10, %c0_11] : memref<16x128xf32, #tpu.memory_space<vmem>>, vector<16x128xf32>
      %c0_12 = arith.constant 0 : index
      %c0_13 = arith.constant 0 : index
      %13 = vector.load %arg5[%c0_12, %c0_13] : memref<1x128xf32, #tpu.memory_space<vmem>>, vector<1x128xf32>
      %14 = vector.broadcast %13 : vector<1x128xf32> to vector<16x128xf32>
      %15 = arith.addf %12, %14 : vector<16x128xf32>
      %c0_14 = arith.constant 0 : index
      %c0_15 = arith.constant 0 : index
      %16 = vector.load %arg6[%c0_14, %c0_15] : memref<16x128xf32, #tpu.memory_space<vmem>>, vector<16x128xf32>
      tpu.vector_store %arg6[%c0_14, %c0_15], %15 {strides = array<i32>} : memref<16x128xf32, #tpu.memory_space<vmem>>, vector<16x128xf32>,
    } else {
    }
    return
  }
  func.func @transform_0(%arg0: i32, %arg1: i32, %arg2: i32) -> (i32, i32) {
    %c0_i32 = arith.constant 0 : i32
    return %arg0, %arg2 : i32, i32
  }
  func.func @transform_1(%arg0: i32, %arg1: i32, %arg2: i32) -> (i32, i32) {
    %c0_i32 = arith.constant 0 : i32
    return %arg2, %arg1 : i32, i32
  }
  func.func @transform_2(%arg0: i32, %arg1: i32, %arg2: i32) -> (i32, i32) {
    %c0_i32 = arith.constant 0 : i32
    %c0_i32_0 = arith.constant 0 : i32
    return %c0_i32, %arg1 : i32, i32
  }
  func.func @transform_3(%arg0: i32, %arg1: i32, %arg2: i32) -> (i32, i32) {
    %c0_i32 = arith.constant 0 : i32
    return %arg0, %arg1 : i32, i32
  }
}

</mosaic_0001>

<bundles_post_ra>
// kernel: linear_pallas.1
= control target key start
LH: loop header
LB: loop body
LE: loop exit
PB: predicated region body
PF: predicated region fallthrough
CT: control target
= control target key end

     0   :  { %8 = vsyncpa [#allocation3], 0  ;;  %s250_s12 = smov [#allocation2]   ;;  %s290_s0 = inlined_call_operand.vmem [shape: bf16[16,128], index: 0, kind: input, shape index: {}]   ;;  %s291_s1 = inlined_call_operand.hbm [shape: bf16[128,128], index: 1, kind: input, shape index: {}]   ;;  %s292_s2 = inlined_call_operand.vmem [shape: f32[1,128], index: 2, kind: input, shape index: {}]   ;;  %s293_s3 = inlined_call_operand.vmem [shape: f32[16,128], index: 3, kind: output, shape index: {}]  }
   0x1   :  { %s16_s13 = sshll.u32 %s250_s12, 4  ;;  %s17_s13 = int_to_ptr.vmem [resolvable:$true] %s16_s13 }
   0x2   :  { %s236_s14 = scalar_lea.vmem %s17_s13, 1024  ;;  %p241_p1 = scmp.lt.s32.totalorder %s17_s13, %s17_s13 }
   0x3   :  { %p237_p0 = scmp.ne.s32.totalorder %s17_s13, %s236_s14  ;;  %p242_p2 = scmp.lt.s32.totalorder %s236_s14, %s236_s14 }
   0x5   :  { %p243_p3 = por %p242_p2, %p241_p1 }
   0x7   :  { %p244_p4 = pnand %p243_p3, %p237_p0 }
   0x9   :  { %247 = shalt.err (!%p244_p4)
}
   0xa   :  { %s251_s15 = smov 64   ;;  %s252_s16 = smov 4  }
   0xb   :  { %22 = dma.hbm_to_vmem [thread:$0]  %s291_s1, 1024, %s17_s13, [#allocation3], %s251_s15, %s251_s15, %s252_s16  }
   0xc   :  { %248 = dma.done.wait [#allocation3], 1024  }
   0xd   :  { %249 = vsyncadd [#allocation3], 4294966272  ;;  %v253_v0 = vmov 0.0   ;;  %vm254_vm0 = vmmov 0   ;;  %v219_v1 = vld [vmem:[#allocation2 + $0x38] sm:$0xff]   ;;  %v220_v2 = vld [vmem:[#allocation2 + $0x30] sm:$0xff]  }
   0xe   :  { %194 = vmatprep.subr.bf16.mxu0 %v253_v0  ;;  %210 = vmatprep.mubr.msk.bf16.mxu0 %vm254_vm0, %v253_v0  ;;  %v221_v3 = vld [vmem:[#allocation2 + $0x28] sm:$0xff]   ;;  %v222_v4 = vld [vmem:[#allocation2 + $0x20] sm:$0xff]   ;;  %v223_v5 = vld [vmem:[#allocation2 + $0x18] sm:$0xff]  }
   0xf   :  { %195 = vmatpush3.bf16.msra.mxu0 %v219_v1  ;;  %v224_v6 = vld [vmem:[#allocation2 + $0x10] sm:$0xff]   ;;  %v225_v7 = vld [vmem:[#allocation2 + $0x8] sm:$0xff]   ;;  %v226_v8 = vld [vmem:[#allocation2] sm:$0xff]  }
  0x10   :  { %196 = vmatprep.subr.bf16.mxu0 %v253_v0  ;;  %v227_v9 = vld [vmem:[%s290_s0] sm:$0xff]  }
  0x11   :  { %v184_v11 = vld [vmem:[%s292_s2] ss:$0 sm:$0xff] }
  0x13   :  { %197 = vmatpush3.bf16.msra.mxu0 %v220_v2 }
  0x14   :  { %198 = vmatprep.subr.bf16.mxu0 %v253_v0 }
  0x17   :  { %199 = vmatpush3.bf16.msra.mxu0 %v221_v3 }
  0x18   :  { %200 = vmatprep.subr.bf16.mxu0 %v253_v0 }
  0x1b   :  { %201 = vmatpush3.bf16.msra.mxu0 %v222_v4 }
  0x1c   :  { %202 = vmatprep.subr.bf16.mxu0 %v253_v0 }
  0x1f   :  { %203 = vmatpush3.bf16.msra.mxu0 %v223_v5 }
  0x20   :  { %204 = vmatprep.subr.bf16.mxu0 %v253_v0 }
  0x23   :  { %205 = vmatpush3.bf16.msra.mxu0 %v224_v6 }
  0x24   :  { %206 = vmatprep.subr.bf16.mxu0 %v253_v0 }
  0x27   :  { %207 = vmatpush3.bf16.msra.mxu0 %v225_v7 }
  0x28   :  { %208 = vmatprep.subr.bf16.mxu0 %v253_v0 }
  0x2b   :  { %209 = vmatpush3.bf16.msra.mxu0 %v226_v8 }
  0x2e   :  { %211 = vmatmul.mubr.bf16.vlgmr.msra.gmra.mxu0 %v227_v9 }
  0xee   :  { %v143_v10 = vpop.f32.mrf.mxu0 }
  0xef   :  { %v166_v13 = vadd.f32 %v184_v11, %v143_v10 }
  0xf0   :  { %v212_v12 = vpop.f32.mrf.mxu0 }
  0xf1   :  { %168 = vst [vmem:[%s293_s3] sm:$0xff] %v166_v13 }
  0xf2   :  { %v146_v14 = vpop.f32.mrf.mxu0 }
  0xf3   :  { %v167_v16 = vadd.f32 %v184_v11, %v146_v14 }
  0xf4   :  { %v213_v15 = vpop.f32.mrf.mxu0 }
  0xf5   :  { %169 = vst [vmem:[%s293_s3 + $0x8] sm:$0xff] %v167_v16 }
  0xf6   :  { %174 = vsyncpa [#allocation3], 1 }

</bundles_post_ra>
